<compile_context>
chip_gen: v7x
topology: tpu7x:2x2x1
jax: 0.10.0
libtpu: 0.0.40
codegen_flags: <defaults>
</compile_context>

<pallas_src>
import jax
import jax.numpy as jnp
from jax.experimental import pallas as pl
from jax.experimental.pallas import tpu as pltpu

# ---------------- model hyper-parameters (small, synthetic) -----------------
HIDDEN = 32          # config.hidden
LAYERS = 2           # config.layers
MAX_SEQ_LEN = 4      # max_seq_len
NUM_VOCAB = 16       # num_vocab
EDGE_DIM = 2         # ogbg-code edge_attr has 2 columns
TEMP = 2.0           # config.T

N_NODES = 16
N_EDGES = 32
N_GRAPHS = 2
NUM_NODETYPES = 8
NUM_NODEATTRS = 8
MAX_DEPTH = 20

# ---------------- packed-parameter slab layout (all last-dim = HIDDEN) ------
TYPE_OFF = 0                                   # 8  rows: type embedding table
ATTR_OFF = TYPE_OFF + NUM_NODETYPES            # 8  rows: attr embedding table
DEPTH_OFF = ATTR_OFF + NUM_NODEATTRS           # 24 rows: depth table (21 valid)
DEPTH_ROWS = 24                                # MAX_DEPTH+1=21 padded to 24
LAYER_OFF = DEPTH_OFF + DEPTH_ROWS             # per-layer blocks start here
PER_LAYER = 8 + 2 * HIDDEN                     # 8 misc rows + w1 (H) + w2 (H)
SLAB_ROWS = LAYER_OFF + LAYERS * PER_LAYER     # 40 + 2*72 = 184 (8-aligned)
# misc block rows: 0 we0, 1 we1, 2 be, 3 b1, 4 b2, 5 (1+eps) replicated, 6-7 pad

HEAD_LANES = 128                               # S*V = 64 zero-padded to 128
HEAD_ROWS = 40                                 # H rows of W + 1 bias row + pad


# ------------------------------ fused Pallas kernel --------------------------
def net_fused_kernel(idxr_ref,   # VMEM i32 [8, E]   row 0: dst, row 1: batch
                     idxc_ref,   # VMEM i32 [E, 8]   cols: src,type,attr,depth,ea0,ea1
                     slab_ref,   # VMEM f32 [SLAB_ROWS, H]  packed params
                     head_ref,   # VMEM f32 [HEAD_ROWS, 128] head W (/T) + bias (/T)
                     out_ref):   # VMEM f32 [G, 128]
    """Fused forward:
       x  = type_emb[t] + attr_emb[a] + depth_emb[min(d, MAX_DEPTH)]
       for each layer: e   = ea0*We0 + ea1*We1 + be         (edge enc, VPU)
                       msg = relu(x[src] + e)               (PyG message)
                       agg = scatter_add(msg, dst)          (aggr='add')
                       x   = MLP((1+eps)*x + agg)           (Lin-ReLU-Lin)
       h_graph = global_add_pool(x, batch)                  (JK='last')
       out     = h_graph @ W_heads + b_heads                (all heads / T)
    """
    N, E, G, H = N_NODES, N_EDGES, N_GRAPHS, HIDDEN
    f32 = jnp.float32

    idxc = idxc_ref[...]                              # [E, 8] i32
    idxr = idxr_ref[...]                              # [8, E] i32

    src_col = idxc[:, 0:1]                            # [E, 1]
    type_col = idxc[0:N, 1:2]                         # [N, 1]
    attr_col = idxc[0:N, 2:3]                         # [N, 1]
    depth_col = idxc[0:N, 3:4]                        # [N, 1]
    ea0 = idxc[:, 4:5].astype(f32)                    # [E, 1]
    ea1 = idxc[:, 5:6].astype(f32)                    # [E, 1]
    dst_row = idxr[0:1, :]                            # [1, E]
    batch_row = idxr[1:2, 0:N]                        # [1, N]

    # --- node encoder (ASTNodeEncoder) via in-kernel one-hot matmuls --------
    type_oh = (jax.lax.broadcasted_iota(jnp.int32, (N, NUM_NODETYPES), 1)
               == type_col).astype(f32)
    attr_oh = (jax.lax.broadcasted_iota(jnp.int32, (N, NUM_NODEATTRS), 1)
               == attr_col).astype(f32)
    depth_oh = (jax.lax.broadcasted_iota(jnp.int32, (N, DEPTH_ROWS), 1)
                == depth_col).astype(f32)
    x = (jnp.dot(type_oh, slab_ref[TYPE_OFF:TYPE_OFF + NUM_NODETYPES, :],
                 preferred_element_type=f32)
         + jnp.dot(attr_oh, slab_ref[ATTR_OFF:ATTR_OFF + NUM_NODEATTRS, :],
                   preferred_element_type=f32)
         + jnp.dot(depth_oh, slab_ref[DEPTH_OFF:DEPTH_OFF + DEPTH_ROWS, :],
                   preferred_element_type=f32))                          # [N,H]

    # --- gather / scatter / pool operators (iota-compare, nothing in HBM) ---
    gmat = (jax.lax.broadcasted_iota(jnp.int32, (E, N), 1)
            == src_col).astype(f32)                                      # [E,N]
    smat = (jax.lax.broadcasted_iota(jnp.int32, (N, E), 0)
            == dst_row).astype(f32)                                      # [N,E]
    pool = (jax.lax.broadcasted_iota(jnp.int32, (G, N), 0)
            == batch_row).astype(f32)                                    # [G,N]

    for l in range(LAYERS):                          # static unroll (L = 2)
        off = LAYER_OFF + l * PER_LAYER
        misc = slab_ref[off:off + 8, :]              # [8, H] (aligned load)
        we0, we1 = misc[0:1, :], misc[1:2, :]
        be, b1, b2 = misc[2:3, :], misc[3:4, :], misc[4:5, :]
        one_plus_eps = misc[5:6, :]
        w1 = slab_ref[off + 8:off + 8 + H, :]        # [H, H]
        w2 = slab_ref[off + 8 + H:off + 8 + 2 * H, :]

        # edge encoder (K=2 Linear) done on the VPU instead of the MXU
        e_emb = ea0 * we0 + ea1 * we1 + be                               # [E,H]
        x_src = jnp.dot(gmat, x, preferred_element_type=f32)            # [E,H]
        msg = jnp.maximum(x_src + e_emb, 0.0)
        agg = jnp.dot(smat, msg, preferred_element_type=f32)            # [N,H]
        h = one_plus_eps * x + agg
        h = jnp.maximum(jnp.dot(h, w1, preferred_element_type=f32) + b1, 0.0)
        x = jnp.dot(h, w2, preferred_element_type=f32) + b2

    # JumpingKnowledge('last') -> x; dropout in eval mode -> identity.
    hg = jnp.dot(pool, x, preferred_element_type=f32)                   # [G,H]
    headv = head_ref[...]                                               # [40,128]
    out_ref[...] = (jnp.dot(hg, headv[0:H, :], preferred_element_type=f32)
                    + headv[H:H + 1, :])                                # [G,128]


# ------------------------------- glue (JAX) ----------------------------------
def _net_forward(params, x_node, edge_index, edge_attr, node_depth, batch):
    # TODO(synk): nodeskip / dropgnn branches are training-time stochastic and
    # host-side numpy edge rewiring; not reproduced (module here runs in eval).
    depth_c = jnp.minimum(node_depth.reshape(-1), MAX_DEPTH).astype(jnp.int32)

    # Column-oriented packed indices: [E, 8] i32.
    idx_col = jnp.zeros((N_EDGES, 8), jnp.int32)
    idx_col = idx_col.at[:, 0].set(edge_index[0].astype(jnp.int32))          # src
    idx_col = idx_col.at[:N_NODES, 1].set(x_node[:, 0].astype(jnp.int32))    # type
    idx_col = idx_col.at[:N_NODES, 2].set(x_node[:, 1].astype(jnp.int32))    # attr
    idx_col = idx_col.at[:N_NODES, 3].set(depth_c)                           # depth
    idx_col = idx_col.at[:, 4].set(edge_attr[:, 0].astype(jnp.int32))        # ea0
    idx_col = idx_col.at[:, 5].set(edge_attr[:, 1].astype(jnp.int32))        # ea1

    # Row-oriented packed indices: [8, E] i32.
    idx_row = jnp.zeros((8, N_EDGES), jnp.int32)
    idx_row = idx_row.at[0, :].set(edge_index[1].astype(jnp.int32))          # dst
    idx_row = idx_row.at[1, :N_NODES].set(batch.astype(jnp.int32))           # batch

    vmem = pl.BlockSpec(memory_space=pltpu.MemorySpace.VMEM)
    out = pl.pallas_call(
        net_fused_kernel,
        out_shape=jax.ShapeDtypeStruct((N_GRAPHS, HEAD_LANES), jnp.float32),
        in_specs=[vmem, vmem, vmem, vmem],
        out_specs=vmem,
    )(idx_row, idx_col, params["slab"], params["head"])

    # Stacked predictions [S, G, V]; preds[i] is the prediction at position i.
    logits = out[:, :MAX_SEQ_LEN * NUM_VOCAB]
    preds = logits.reshape(N_GRAPHS, MAX_SEQ_LEN, NUM_VOCAB).transpose(1, 0, 2)
    return preds


net_forward = jax.jit(_net_forward)


def init_params(key):
    ks = jax.random.split(key, 5 + LAYERS)

    def dense(k, shape, scale=0.1):
        return scale * jax.random.normal(k, shape, dtype=jnp.float32)

    type_emb = dense(ks[0], (NUM_NODETYPES, HIDDEN))
    attr_emb = dense(ks[1], (NUM_NODEATTRS, HIDDEN))
    depth_emb = dense(ks[2], (MAX_DEPTH + 1, HIDDEN))

    # graph_pred_linear_list: one Linear(hidden, num_vocab) per seq position,
    # flattened to [H, S*V] with 1/T folded in, zero-padded to 128 lanes.
    pred_w = dense(ks[3], (MAX_SEQ_LEN, HIDDEN, NUM_VOCAB))
    pred_b = dense(ks[4], (MAX_SEQ_LEN, NUM_VOCAB))
    pred_w_flat = (jnp.transpose(pred_w, (1, 0, 2))
                   .reshape(HIDDEN, MAX_SEQ_LEN * NUM_VOCAB)) / TEMP
    pred_b_flat = pred_b.reshape(MAX_SEQ_LEN * NUM_VOCAB) / TEMP
    head = jnp.zeros((HEAD_ROWS, HEAD_LANES), jnp.float32)
    head = head.at[0:HIDDEN, 0:MAX_SEQ_LEN * NUM_VOCAB].set(pred_w_flat)
    head = head.at[HIDDEN, 0:MAX_SEQ_LEN * NUM_VOCAB].set(pred_b_flat)

    # Packed parameter slab [SLAB_ROWS, H].
    # Note: the edge encoder is a Linear over the 2 raw edge_attr columns
    # (ogb/code GNN example uses torch.nn.Linear(2, emb_dim)).
    slab = jnp.zeros((SLAB_ROWS, HIDDEN), jnp.float32)
    slab = slab.at[TYPE_OFF:TYPE_OFF + NUM_NODETYPES].set(type_emb)
    slab = slab.at[ATTR_OFF:ATTR_OFF + NUM_NODEATTRS].set(attr_emb)
    slab = slab.at[DEPTH_OFF:DEPTH_OFF + MAX_DEPTH + 1].set(depth_emb)
    eps = 0.0                                   # GIN eps init
    for l in range(LAYERS):
        lk = jax.random.split(ks[5 + l], 6)
        off = LAYER_OFF + l * PER_LAYER
        slab = slab.at[off + 0:off + 2].set(dense(lk[0], (EDGE_DIM, HIDDEN)))  # We
        slab = slab.at[off + 2].set(dense(lk[1], (HIDDEN,)))                   # be
        slab = slab.at[off + 3].set(dense(lk[2], (HIDDEN,)))                   # b1
        slab = slab.at[off + 4].set(dense(lk[3], (HIDDEN,)))                   # b2
        slab = slab.at[off + 5].set(jnp.full((HIDDEN,), 1.0 + eps, jnp.float32))
        slab = slab.at[off + 8:off + 8 + HIDDEN].set(dense(lk[4], (HIDDEN, HIDDEN)))
        slab = slab.at[off + 8 + HIDDEN:off + 8 + 2 * HIDDEN].set(
            dense(lk[5], (HIDDEN, HIDDEN)))

    return {"slab": slab, "head": head}


if __name__ == "__main__":
    key = jax.random.PRNGKey(0)
    k_par, k_x, k_d, k_ei, k_ea = jax.random.split(key, 5)

    params = init_params(k_par)

    # batched_data fields (small synthetic batch of 2 graphs, 8 nodes each)
    x_node = jax.random.randint(k_x, (N_NODES, 2), 0, NUM_NODETYPES,
                                dtype=jnp.int32)
    node_depth = jax.random.randint(k_d, (N_NODES, 1), 0, MAX_DEPTH,
                                    dtype=jnp.int32)
    edge_index = jax.random.randint(k_ei, (2, N_EDGES), 0, N_NODES,
                                    dtype=jnp.int32)
    edge_attr = jax.random.randint(k_ea, (N_EDGES, EDGE_DIM), 0, 3,
                                   dtype=jnp.int32)
    batch = jnp.concatenate([jnp.zeros(8, jnp.int32), jnp.ones(8, jnp.int32)])

    preds = net_forward(params, x_node, edge_index, edge_attr,
                        node_depth, batch)
    jax.block_until_ready(preds)
    assert preds.shape == (MAX_SEQ_LEN, N_GRAPHS, NUM_VOCAB)
    assert all(preds[i].shape == (N_GRAPHS, NUM_VOCAB)
               for i in range(MAX_SEQ_LEN))
    print("KERNEL_OK")
</pallas_src>

<mosaic_0001>
module attributes {stable_mosaic.version = 11 : i64} {
  func.func @net_fused_kernel(%arg0: memref<8x32xi32, #tpu.memory_space<vmem>>, %arg1: memref<32x8xi32, #tpu.memory_space<vmem>>, %arg2: memref<184x32xf32, #tpu.memory_space<vmem>>, %arg3: memref<40x128xf32, #tpu.memory_space<vmem>>, %arg4: memref<2x128xf32, #tpu.memory_space<vmem>>) attributes {dimension_semantics = [], scalar_prefetch = 0 : i64, scratch_operands = 0 : i64, tpu.core_type = #tpu.core_type<tc>} {
    %c0 = arith.constant 0 : index
    %c0_0 = arith.constant 0 : index
    %0 = vector.load %arg1[%c0, %c0_0] : memref<32x8xi32, #tpu.memory_space<vmem>>, vector<32x8xi32>
    %c0_1 = arith.constant 0 : index
    %c0_2 = arith.constant 0 : index
    %1 = vector.load %arg0[%c0_1, %c0_2] : memref<8x32xi32, #tpu.memory_space<vmem>>, vector<8x32xi32>
    %2 = vector.extract_strided_slice %0 {offsets = [0, 0], sizes = [32, 1], strides = [1, 1]} : vector<32x8xi32> to vector<32x1xi32>
    %3 = vector.extract_strided_slice %0 {offsets = [0, 1], sizes = [16, 1], strides = [1, 1]} : vector<32x8xi32> to vector<16x1xi32>
    %4 = vector.extract_strided_slice %0 {offsets = [0, 2], sizes = [16, 1], strides = [1, 1]} : vector<32x8xi32> to vector<16x1xi32>
    %5 = vector.extract_strided_slice %0 {offsets = [0, 3], sizes = [16, 1], strides = [1, 1]} : vector<32x8xi32> to vector<16x1xi32>
    %6 = vector.extract_strided_slice %0 {offsets = [0, 4], sizes = [32, 1], strides = [1, 1]} : vector<32x8xi32> to vector<32x1xi32>
    %7 = arith.sitofp %6 : vector<32x1xi32> to vector<32x1xf32>
    %8 = vector.extract_strided_slice %0 {offsets = [0, 5], sizes = [32, 1], strides = [1, 1]} : vector<32x8xi32> to vector<32x1xi32>
    %9 = arith.sitofp %8 : vector<32x1xi32> to vector<32x1xf32>
    %10 = vector.extract_strided_slice %1 {offsets = [0, 0], sizes = [1, 32], strides = [1, 1]} : vector<8x32xi32> to vector<1x32xi32>
    %11 = vector.extract_strided_slice %1 {offsets = [1, 0], sizes = [1, 16], strides = [1, 1]} : vector<8x32xi32> to vector<1x16xi32>
    %12 = tpu.iota {dimensions = array<i32: 1>} : vector<16x8xi32>
    %13 = vector.broadcast %3 : vector<16x1xi32> to vector<16x8xi32>
    %14 = arith.cmpi eq, %12, %13 : vector<16x8xi32>
    %15 = arith.extui %14 : vector<16x8xi1> to vector<16x8xi32>
    %16 = arith.sitofp %15 : vector<16x8xi32> to vector<16x8xf32>
    %17 = tpu.iota {dimensions = array<i32: 1>} : vector<16x8xi32>
    %18 = vector.broadcast %4 : vector<16x1xi32> to vector<16x8xi32>
    %19 = arith.cmpi eq, %17, %18 : vector<16x8xi32>
    %20 = arith.extui %19 : vector<16x8xi1> to vector<16x8xi32>
    %21 = arith.sitofp %20 : vector<16x8xi32> to vector<16x8xf32>
    %22 = tpu.iota {dimensions = array<i32: 1>} : vector<16x24xi32>
    %23 = vector.broadcast %5 : vector<16x1xi32> to vector<16x24xi32>
    %24 = arith.cmpi eq, %22, %23 : vector<16x24xi32>
    %25 = arith.extui %24 : vector<16x24xi1> to vector<16x24xi32>
    %26 = arith.sitofp %25 : vector<16x24xi32> to vector<16x24xf32>
    %c0_3 = arith.constant 0 : index
    %c0_4 = arith.constant 0 : index
    %27 = vector.load %arg2[%c0_3, %c0_4] : memref<184x32xf32, #tpu.memory_space<vmem>>, vector<8x32xf32>
    %cst = arith.constant dense<0.000000e+00> : vector<16x32xf32>
    %28 = tpu.matmul %16, %27, %cst {dimension_numbers = #tpu.dot_dimension_numbers<[1], [0], [0], [1], [0, 0, 1, 1], [], []>} : vector<16x8xf32>, vector<8x32xf32>, vector<16x32xf32> -> vector<16x32xf32>
    %c8 = arith.constant 8 : index
    %c0_5 = arith.constant 0 : index
    %29 = vector.load %arg2[%c8, %c0_5] : memref<184x32xf32, #tpu.memory_space<vmem>>, vector<8x32xf32>
    %cst_6 = arith.constant dense<0.000000e+00> : vector<16x32xf32>
    %30 = tpu.matmul %21, %29, %cst_6 {dimension_numbers = #tpu.dot_dimension_numbers<[1], [0], [0], [1], [0, 0, 1, 1], [], []>} : vector<16x8xf32>, vector<8x32xf32>, vector<16x32xf32> -> vector<16x32xf32>
    %31 = arith.addf %28, %30 : vector<16x32xf32>
    %c16 = arith.constant 16 : index
    %c0_7 = arith.constant 0 : index
    %32 = vector.load %arg2[%c16, %c0_7] : memref<184x32xf32, #tpu.memory_space<vmem>>, vector<24x32xf32>
    %cst_8 = arith.constant dense<0.000000e+00> : vector<16x32xf32>
    %33 = tpu.matmul %26, %32, %cst_8 {dimension_numbers = #tpu.dot_dimension_numbers<[1], [0], [0], [1], [0, 0, 1, 1], [], []>} : vector<16x24xf32>, vector<24x32xf32>, vector<16x32xf32> -> vector<16x32xf32>
    %34 = arith.addf %31, %33 : vector<16x32xf32>
    %35 = tpu.iota {dimensions = array<i32: 1>} : vector<32x16xi32>
    %36 = vector.broadcast %2 : vector<32x1xi32> to vector<32x16xi32>
    %37 = arith.cmpi eq, %35, %36 : vector<32x16xi32>
    %38 = arith.extui %37 : vector<32x16xi1> to vector<32x16xi32>
    %39 = arith.sitofp %38 : vector<32x16xi32> to vector<32x16xf32>
    %40 = tpu.iota {dimensions = array<i32: 0>} : vector<16x32xi32>
    %41 = vector.broadcast %10 : vector<1x32xi32> to vector<16x32xi32>
    %42 = arith.cmpi eq, %40, %41 : vector<16x32xi32>
    %43 = arith.extui %42 : vector<16x32xi1> to vector<16x32xi32>
    %44 = arith.sitofp %43 : vector<16x32xi32> to vector<16x32xf32>
    %45 = tpu.iota {dimensions = array<i32: 0>} : vector<2x16xi32>
    %46 = vector.broadcast %11 : vector<1x16xi32> to vector<2x16xi32>
    %47 = arith.cmpi eq, %45, %46 : vector<2x16xi32>
    %48 = arith.extui %47 : vector<2x16xi1> to vector<2x16xi32>
    %49 = arith.sitofp %48 : vector<2x16xi32> to vector<2x16xf32>
    %c40 = arith.constant 40 : index
    %c0_9 = arith.constant 0 : index
    %50 = vector.load %arg2[%c40, %c0_9] : memref<184x32xf32, #tpu.memory_space<vmem>>, vector<8x32xf32>
    %51 = vector.extract_strided_slice %50 {offsets = [0, 0], sizes = [1, 32], strides = [1, 1]} : vector<8x32xf32> to vector<1x32xf32>
    %52 = vector.extract_strided_slice %50 {offsets = [1, 0], sizes = [1, 32], strides = [1, 1]} : vector<8x32xf32> to vector<1x32xf32>
    %53 = vector.extract_strided_slice %50 {offsets = [2, 0], sizes = [1, 32], strides = [1, 1]} : vector<8x32xf32> to vector<1x32xf32>
    %54 = vector.extract_strided_slice %50 {offsets = [3, 0], sizes = [1, 32], strides = [1, 1]} : vector<8x32xf32> to vector<1x32xf32>
    %55 = vector.extract_strided_slice %50 {offsets = [4, 0], sizes = [1, 32], strides = [1, 1]} : vector<8x32xf32> to vector<1x32xf32>
    %56 = vector.extract_strided_slice %50 {offsets = [5, 0], sizes = [1, 32], strides = [1, 1]} : vector<8x32xf32> to vector<1x32xf32>
    %c48 = arith.constant 48 : index
    %c0_10 = arith.constant 0 : index
    %57 = vector.load %arg2[%c48, %c0_10] : memref<184x32xf32, #tpu.memory_space<vmem>>, vector<32x32xf32>
    %c80 = arith.constant 80 : index
    %c0_11 = arith.constant 0 : index
    %58 = vector.load %arg2[%c80, %c0_11] : memref<184x32xf32, #tpu.memory_space<vmem>>, vector<32x32xf32>
    %59 = vector.broadcast %7 : vector<32x1xf32> to vector<32x32xf32>
    %60 = vector.broadcast %51 : vector<1x32xf32> to vector<32x32xf32>
    %61 = arith.mulf %59, %60 : vector<32x32xf32>
    %62 = vector.broadcast %9 : vector<32x1xf32> to vector<32x32xf32>
    %63 = vector.broadcast %52 : vector<1x32xf32> to vector<32x32xf32>
    %64 = arith.mulf %62, %63 : vector<32x32xf32>
    %65 = arith.addf %61, %64 : vector<32x32xf32>
    %66 = vector.broadcast %53 : vector<1x32xf32> to vector<32x32xf32>
    %67 = arith.addf %65, %66 : vector<32x32xf32>
    %cst_12 = arith.constant dense<0.000000e+00> : vector<32x32xf32>
    %68 = tpu.matmul %39, %34, %cst_12 {dimension_numbers = #tpu.dot_dimension_numbers<[1], [0], [0], [1], [0, 0, 1, 1], [], []>} : vector<32x16xf32>, vector<16x32xf32>, vector<32x32xf32> -> vector<32x32xf32>
    %69 = arith.addf %68, %67 : vector<32x32xf32>
    %cst_13 = arith.constant 0.000000e+00 : f32
    %70 = vector.broadcast %cst_13 : f32 to vector<32x32xf32>
    %71 = arith.maximumf %69, %70 : vector<32x32xf32>
    %cst_14 = arith.constant dense<0.000000e+00> : vector<16x32xf32>
    %72 = tpu.matmul %44, %71, %cst_14 {dimension_numbers = #tpu.dot_dimension_numbers<[1], [0], [0], [1], [0, 0, 1, 1], [], []>} : vector<16x32xf32>, vector<32x32xf32>, vector<16x32xf32> -> vector<16x32xf32>
    %73 = vector.broadcast %56 : vector<1x32xf32> to vector<16x32xf32>
    %74 = arith.mulf %73, %34 : vector<16x32xf32>
    %75 = arith.addf %74, %72 : vector<16x32xf32>
    %cst_15 = arith.constant dense<0.000000e+00> : vector<16x32xf32>
    %76 = tpu.matmul %75, %57, %cst_15 {dimension_numbers = #tpu.dot_dimension_numbers<[1], [0], [0], [1], [0, 0, 1, 1], [], []>} : vector<16x32xf32>, vector<32x32xf32>, vector<16x32xf32> -> vector<16x32xf32>
    %77 = vector.broadcast %54 : vector<1x32xf32> to vector<16x32xf32>
    %78 = arith.addf %76, %77 : vector<16x32xf32>
    %cst_16 = arith.constant 0.000000e+00 : f32
    %79 = vector.broadcast %cst_16 : f32 to vector<16x32xf32>
    %80 = arith.maximumf %78, %79 : vector<16x32xf32>
    %cst_17 = arith.constant dense<0.000000e+00> : vector<16x32xf32>
    %81 = tpu.matmul %80, %58, %cst_17 {dimension_numbers = #tpu.dot_dimension_numbers<[1], [0], [0], [1], [0, 0, 1, 1], [], []>} : vector<16x32xf32>, vector<32x32xf32>, vector<16x32xf32> -> vector<16x32xf32>
    %82 = vector.broadcast %55 : vector<1x32xf32> to vector<16x32xf32>
    %83 = arith.addf %81, %82 : vector<16x32xf32>
    %c112 = arith.constant 112 : index
    %c0_18 = arith.constant 0 : index
    %84 = vector.load %arg2[%c112, %c0_18] : memref<184x32xf32, #tpu.memory_space<vmem>>, vector<8x32xf32>
    %85 = vector.extract_strided_slice %84 {offsets = [0, 0], sizes = [1, 32], strides = [1, 1]} : vector<8x32xf32> to vector<1x32xf32>
    %86 = vector.extract_strided_slice %84 {offsets = [1, 0], sizes = [1, 32], strides = [1, 1]} : vector<8x32xf32> to vector<1x32xf32>
    %87 = vector.extract_strided_slice %84 {offsets = [2, 0], sizes = [1, 32], strides = [1, 1]} : vector<8x32xf32> to vector<1x32xf32>
    %88 = vector.extract_strided_slice %84 {offsets = [3, 0], sizes = [1, 32], strides = [1, 1]} : vector<8x32xf32> to vector<1x32xf32>
    %89 = vector.extract_strided_slice %84 {offsets = [4, 0], sizes = [1, 32], strides = [1, 1]} : vector<8x32xf32> to vector<1x32xf32>
    %90 = vector.extract_strided_slice %84 {offsets = [5, 0], sizes = [1, 32], strides = [1, 1]} : vector<8x32xf32> to vector<1x32xf32>
    %c120 = arith.constant 120 : index
    %c0_19 = arith.constant 0 : index
    %91 = vector.load %arg2[%c120, %c0_19] : memref<184x32xf32, #tpu.memory_space<vmem>>, vector<32x32xf32>
    %c152 = arith.constant 152 : index
    %c0_20 = arith.constant 0 : index
    %92 = vector.load %arg2[%c152, %c0_20] : memref<184x32xf32, #tpu.memory_space<vmem>>, vector<32x32xf32>
    %93 = vector.broadcast %7 : vector<32x1xf32> to vector<32x32xf32>
    %94 = vector.broadcast %85 : vector<1x32xf32> to vector<32x32xf32>
    %95 = arith.mulf %93, %94 : vector<32x32xf32>
    %96 = vector.broadcast %9 : vector<32x1xf32> to vector<32x32xf32>
    %97 = vector.broadcast %86 : vector<1x32xf32> to vector<32x32xf32>
    %98 = arith.mulf %96, %97 : vector<32x32xf32>
    %99 = arith.addf %95, %98 : vector<32x32xf32>
    %100 = vector.broadcast %87 : vector<1x32xf32> to vector<32x32xf32>
    %101 = arith.addf %99, %100 : vector<32x32xf32>
    %cst_21 = arith.constant dense<0.000000e+00> : vector<32x32xf32>
    %102 = tpu.matmul %39, %83, %cst_21 {dimension_numbers = #tpu.dot_dimension_numbers<[1], [0], [0], [1], [0, 0, 1, 1], [], []>} : vector<32x16xf32>, vector<16x32xf32>, vector<32x32xf32> -> vector<32x32xf32>
    %103 = arith.addf %102, %101 : vector<32x32xf32>
    %cst_22 = arith.constant 0.000000e+00 : f32
    %104 = vector.broadcast %cst_22 : f32 to vector<32x32xf32>
    %105 = arith.maximumf %103, %104 : vector<32x32xf32>
    %cst_23 = arith.constant dense<0.000000e+00> : vector<16x32xf32>
    %106 = tpu.matmul %44, %105, %cst_23 {dimension_numbers = #tpu.dot_dimension_numbers<[1], [0], [0], [1], [0, 0, 1, 1], [], []>} : vector<16x32xf32>, vector<32x32xf32>, vector<16x32xf32> -> vector<16x32xf32>
    %107 = vector.broadcast %90 : vector<1x32xf32> to vector<16x32xf32>
    %108 = arith.mulf %107, %83 : vector<16x32xf32>
    %109 = arith.addf %108, %106 : vector<16x32xf32>
    %cst_24 = arith.constant dense<0.000000e+00> : vector<16x32xf32>
    %110 = tpu.matmul %109, %91, %cst_24 {dimension_numbers = #tpu.dot_dimension_numbers<[1], [0], [0], [1], [0, 0, 1, 1], [], []>} : vector<16x32xf32>, vector<32x32xf32>, vector<16x32xf32> -> vector<16x32xf32>
    %111 = vector.broadcast %88 : vector<1x32xf32> to vector<16x32xf32>
    %112 = arith.addf %110, %111 : vector<16x32xf32>
    %cst_25 = arith.constant 0.000000e+00 : f32
    %113 = vector.broadcast %cst_25 : f32 to vector<16x32xf32>
    %114 = arith.maximumf %112, %113 : vector<16x32xf32>
    %cst_26 = arith.constant dense<0.000000e+00> : vector<16x32xf32>
    %115 = tpu.matmul %114, %92, %cst_26 {dimension_numbers = #tpu.dot_dimension_numbers<[1], [0], [0], [1], [0, 0, 1, 1], [], []>} : vector<16x32xf32>, vector<32x32xf32>, vector<16x32xf32> -> vector<16x32xf32>
    %116 = vector.broadcast %89 : vector<1x32xf32> to vector<16x32xf32>
    %117 = arith.addf %115, %116 : vector<16x32xf32>
    %cst_27 = arith.constant dense<0.000000e+00> : vector<2x32xf32>
    %118 = tpu.matmul %49, %117, %cst_27 {dimension_numbers = #tpu.dot_dimension_numbers<[1], [0], [0], [1], [0, 0, 1, 1], [], []>} : vector<2x16xf32>, vector<16x32xf32>, vector<2x32xf32> -> vector<2x32xf32>
    %c0_28 = arith.constant 0 : index
    %c0_29 = arith.constant 0 : index
    %119 = vector.load %arg3[%c0_28, %c0_29] : memref<40x128xf32, #tpu.memory_space<vmem>>, vector<40x128xf32>
    %120 = vector.extract_strided_slice %119 {offsets = [0, 0], sizes = [32, 128], strides = [1, 1]} : vector<40x128xf32> to vector<32x128xf32>
    %cst_30 = arith.constant dense<0.000000e+00> : vector<2x128xf32>
    %121 = tpu.matmul %118, %120, %cst_30 {dimension_numbers = #tpu.dot_dimension_numbers<[1], [0], [0], [1], [0, 0, 1, 1], [], []>} : vector<2x32xf32>, vector<32x128xf32>, vector<2x128xf32> -> vector<2x128xf32>
    %122 = vector.extract_strided_slice %119 {offsets = [32, 0], sizes = [1, 128], strides = [1, 1]} : vector<40x128xf32> to vector<1x128xf32>
    %123 = vector.broadcast %122 : vector<1x128xf32> to vector<2x128xf32>
    %124 = arith.addf %121, %123 : vector<2x128xf32>
    %c0_31 = arith.constant 0 : index
    %c0_32 = arith.constant 0 : index
    %125 = vector.load %arg4[%c0_31, %c0_32] : memref<2x128xf32, #tpu.memory_space<vmem>>, vector<2x128xf32>
    tpu.vector_store %arg4[%c0_31, %c0_32], %124 {strides = array<i32>} : memref<2x128xf32, #tpu.memory_space<vmem>>, vector<2x128xf32>,
    return
  }
}

</mosaic_0001>

<bundles_post_ra>
// kernel: _net_forward.1
= control target key start
LH: loop header
LB: loop body
LE: loop exit
PB: predicated region body
PF: predicated region fallthrough
CT: control target
= control target key end

     0   :  { %v1663_v0 = vmov 2   ;;  %v1664_v1 = vmov 1   ;;  %v1665_v5 = vmov 3   ;;  %v1666_v10 = vmov 0   ;;  %s1974_s1 = inlined_call_operand.vmem [shape: s32[32,8], index: 1, kind: input, shape index: {}]   ;;  %s1975_s2 = inlined_call_operand.vmem [shape: f32[184,32], index: 2, kind: input, shape index: {}]   ;;  %s1976_s0 = inlined_call_operand.vmem [shape: s32[8,32], index: 0, kind: input, shape index: {}]   ;;  %s1977_s3 = inlined_call_operand.vmem [shape: f32[40,128], index: 3, kind: input, shape index: {}]   ;;  %s1978_s4 = inlined_call_operand.vmem [shape: f32[2,128], index: 4, kind: output, shape index: {}]  }
   0x1   :  { %1652 = vset.pattern.permute.xlu1 %v1663_v0  ;;  %1651 = vset.pattern.permute.xlu0 %v1664_v1  ;;  %v1700_v2 = vld [vmem:[%s1974_s1] sm:$0xff]  ;;  %v1707_v3 = vld [vmem:[%s1974_s1 + $0x8] sm:$0xff]  ;;  %v229_v6 = vld [vmem:[%s1975_s2 + $0x10] sm:$0xff]  ;;  %v26_v13 = vlaneseq  ;;  %vm66_vm0 = vcmask 64512   ;;  %v1667_v17 = vmov 0.0   ;;  %vm232_vm4 = vcmask 195584  }
   0x2   :  { %41 = vperm.xlu1 %1652, %v1700_v2   ;;  %29 = vperm.xlu0 %1651, %v1700_v2   ;;  %v64_v4 = vld [vmem:[%s1975_s2] sm:$0xff]  ;;  %v230_v7 = vld [vmem:[%s1975_s2 + $0x18] sm:$0xff]  ;;  %v65_v9 = vld [vmem:[%s1975_s2 + $0x8] sm:$0xff]  ;;  %vm433_vm9 = vcmask 130048   ;;  %v23_v31 = vcvt.s32.f32 %v1707_v3  ;;  %v22_v32 = vcvt.s32.f32 %v1700_v2  ;;  %v1668_v33 = vmov 4  }
   0x3   :  { %1451 = vmatprep.subr.mxu0 %v64_v4  ;;  %v1569_v8 = vpack.c.bf16 %v230_v7, %v229_v6  ;;  %1446 = vmatprep.subr.mxu1 %v65_v9  ;;  %v19_v11 = vld [vmem:[%s1974_s1 + $0x10] sm:$0xff]  ;;  %v20_v12 = vld [vmem:[%s1974_s1 + $0x18] sm:$0xff]  ;;  %v1734_v14 = vand.u32 127, %v26_v13  ;;  %v231_v23 = vld [vmem:[%s1975_s2 + $0x20] sm:$0xff]  ;;  %v1669_v34 = vmov 5   ;;  %v1777_v48 = vshrl.u32 %v26_v13, 7 }
   0x4   :  { %1452 = vmatpush3.msra.mxu0 %v64_v4  ;;  %1447 = vmatpush3.msra.mxu1 %v65_v9  ;;  %v24_v35 = vcvt.s32.f32 %v19_v11  ;;  %v25_v36 = vcvt.s32.f32 %v20_v12  ;;  %v1793_v51 = vld [vmem:[%s1975_s2 + $0x70] sm:$0xff]  ;;  %vm535_vm14 = vcmask 261120  }
   0x5   :  { %1570 = vmatprep.subr.bf16.mxu0 %v1569_v8  ;;  %v1788_v50 = vsub.s32 0, %v1777_v48  ;;  %v1799_v53 = vsub.s32 1, %v1777_v48 }
   0x6   :  { %1653 = vset.pattern.permute.xlu1 %v1665_v5  ;;  %32 = vperm.xlu0 %1651, %v1707_v3  }
   0x7   :  { %53 = vperm.xlu1 %1653, %v1700_v2   ;;  %v809_v54 = vrot.slane %v1793_v51, %v1788_v50  ;;  %v817_v57 = vrot.slane %v1793_v51, %v1799_v53 }
   0xa   :  { %1654 = vset.pattern.permute.xlu0 %v1663_v0 }
   0xb   :  { %56 = vperm.xlu1 %1653, %v1707_v3   ;;  %44 = vperm.xlu0 %1654, %v1707_v3  }
   0xf   :  { %1655 = vset.pattern.permute.xlu1 %v1666_v10  ;;  %1656 = vset.pattern.permute.xlu0 %v1666_v10 }
  0x10   :  { %317 = vperm.xlu1 %1655, %v1700_v2   ;;  %320 = vperm.xlu0 %1656, %v1707_v3  }
  0x14   :  { %323 = vperm.xlu1 %1655, %v19_v11   ;;  %1657 = vset.pattern.permute.xlu0 %v1668_v33 }
  0x15   :  { %371 = vperm.xlu0 %1657, %v22_v32  }
  0x18   :  { %326 = vperm.xlu1 %1655, %v20_v12   ;;  %v1818_v12 = vld [vmem:[%s1976_s0] sm:$0xff] }
  0x19   :  { %1660 = vset.pattern.permute.xlu0 %v1669_v34  ;;  %v346_v13 = vrot.slane %v1818_v12, %v1788_v50 }
  0x1a   :  { %402 = vperm.xlu0 %1660, %v23_v31  }
  0x1b   :  { %vm347_vm13 = vcmp.eq.s32.totalorder %v1777_v48, %v346_v13 }
  0x1c   :  { %1658 = vset.pattern.permute.xlu1 %v1668_v33 }
  0x1d   :  { %376 = vperm.xlu1 %1658, %v23_v31  }
  0x1e   :  { %406 = vperm.xlu0 %1660, %v24_v35  }
  0x21   :  { %1659 = vset.pattern.permute.xlu1 %v1669_v34 }
  0x22   :  { %398 = vperm.xlu1 %1659, %v22_v32  }
  0x26   :  { %1661 = vset.pattern.permute.xlu1 %v1668_v33 }
  0x27   :  { %381 = vperm.xlu1 %1661, %v24_v35  }
  0x2b   :  { %386 = vperm.xlu1 %1661, %v25_v36  }
  0x2f   :  { %1662 = vset.pattern.permute.xlu1 %v1669_v34 }
  0x30   :  { %410 = vperm.xlu1 %1662, %v25_v36  }
  0x81   :  { %v30_v15 = vpop.permute.xlu0 %29  ;;  %v42_v16 = vpop.permute.xlu1 %41 }
  0x82   :  { %vm34_vm1 = vcmp.eq.s32.totalorder %v1734_v14, %v30_v15  ;;  %vm46_vm2 = vcmp.eq.s32.totalorder %v1734_v14, %v42_v16  ;;  %v361_v15 = vld [vmem:[%s1975_s2 + $0x30] sm:$0xff]  ;;  %v362_v16 = vld [vmem:[%s1975_s2 + $0x38] sm:$0xff] }
  0x83   :  { %v1338_v18 = vsel %vm34_vm1, 1.0, %v1667_v17  ;;  %v1340_v19 = vsel %vm46_vm2, 1.0, %v1667_v17 }
  0x84   :  { %1453 = vmatprep.mubr.msk.f32.mxu0 %vm66_vm0, %v1338_v18  ;;  %1448 = vmatprep.mubr.msk.f32.mxu1 %vm66_vm0, %v1340_v19  ;;  %v1585_v18 = vpack.c.bf16 %v362_v16, %v361_v15  ;;  %v1837_v19 = vld [vmem:[%s1975_s2 + $0x28] sm:$0xff] }
  0x85   :  { %v33_v20 = vpop.permute.xlu0 %32 }
  0x86   :  { %vm35_vm3 = vcmp.eq.s32.totalorder %v1734_v14, %v33_v20  ;;  %v54_v21 = vpop.permute.xlu1 %53  ;;  %v392_v20 = vrot.slane %v1837_v19, %v1788_v50 }
  0x87   :  { %v1339_v22 = vsel %vm35_vm3, 1.0, %v1667_v17  ;;  %vm58_vm5 = vcmp.eq.s32.totalorder %v1734_v14, %v54_v21  ;;  %v416_v21 = vrot.slane %v1837_v19, %v1799_v53 }
  0x88   :  { %v1342_v24 = vsel %vm58_vm5, 1.0, %v1667_v17  ;;  %1454 = vmatmul.mubr.msk.f32.vlgmr.msra.gmra.mrb[0].mxu0 %vm66_vm0, %v1339_v22 }
  0x89   :  { %1572 = vmatpush3.bf16.msra.mxu0 %v1569_v8  ;;  %1462 = vmatprep.mubr.msk.f32.mxu0 %vm232_vm4, %v1342_v24  ;;  %v427_v24 = vsub.s32 2, %v1777_v48 }
  0x8a   :  { %v57_v25 = vpop.permute.xlu1 %56  ;;  %1460 = vmatprep.subr.mxu0 %v231_v23  ;;  %v45_v26 = vpop.permute.xlu0 %44 }
  0x8b   :  { %vm47_vm6 = vcmp.eq.s32.totalorder %v1734_v14, %v45_v26  ;;  %vm59_vm7 = vcmp.eq.s32.totalorder %v1734_v14, %v57_v25  ;;  %v428_v31 = vrot.slane %v1837_v19, %v427_v24 }
  0x8c   :  { %v1341_v27 = vsel %vm47_vm6, 1.0, %v1667_v17  ;;  %v1343_v28 = vsel %vm59_vm7, 1.0, %v1667_v17 }
  0x8d   :  { %1461 = vmatpush3.msra.mxu0 %v231_v23  ;;  %1449 = vmatmul.mubr.msk.f32.vlgmr.msra.gmra.mrb[0].mxu1 %vm66_vm0, %v1341_v27  ;;  %vm1671_vm0 = vmmov 0  }
  0x8e   :  { %1586 = vmatprep.subr.bf16.mxu0 %v1585_v18 }
  0x8f   :  { %v318_v29 = vpop.permute.xlu1 %317  ;;  %v321_v43 = vpop.permute.xlu0 %320 }
  0x90   :  { %1463 = vmatmul.mubr.msk.f32.vlgmr.msra.gmra.mrb[0].mxu0 %vm232_vm4, %v1343_v28  ;;  %vm328_vm8 = vcmp.eq.s32.totalorder %v1734_v14, %v318_v29  ;;  %vm329_vm10 = vcmp.eq.s32.totalorder %v1734_v14, %v321_v43 }
  0x91   :  { %v1759_v30 = vsel %vm328_vm8, 1.0, %v1667_v17  ;;  %v1774_v47 = vsel %vm329_vm10, 1.0, %v1667_v17  ;;  %1588 = vmatpush3.bf16.msra.mxu0 %v1585_v18 }
  0x92   :  { %1469 = vmatprep.mubr.msk.f32.mxu1 %vm433_vm9, %v1759_v30 }
  0x93   :  { %v324_v39 = vpop.permute.xlu1 %323 }
  0x94   :  { %vm330_vm11 = vcmp.eq.s32.totalorder %v1734_v14, %v324_v39  ;;  %v372_v56 = vpop.permute.xlu0 %371 }
  0x95   :  { %v1780_v49 = vsel %vm330_vm11, 1.0, %v1667_v17  ;;  %v810_v59 = vmul.f32 %v809_v54, %v372_v56  ;;  %v393_v25 = vmul.f32 %v392_v20, %v372_v56 }
  0x97   :  { %v327_v46 = vpop.permute.xlu1 %326 }
  0x98   :  { %vm331_vm12 = vcmp.eq.s32.totalorder %v1734_v14, %v327_v46  ;;  %v1824_v14 = vsel %vm347_vm13, 1.0, %v1667_v17 }
  0x99   :  { %v1796_v52 = vsel %vm331_vm12, 1.0, %v1667_v17  ;;  %v403_v61 = vpop.permute.xlu0 %402 }
  0x9a   :  { %v819_v63 = vmul.f32 %v817_v57, %v403_v61  ;;  %v418_v23 = vmul.f32 %v416_v21, %v403_v61  ;;  %v342_v61 = vadd.s32 8, %v1777_v48 }
  0x9c   :  { %v377_v55 = vpop.permute.xlu1 %376  ;;  %vm348_vm15 = vcmp.eq.s32.totalorder %v342_v61, %v346_v13  ;;  %v619_v13 = vsub.s32 5, %v1777_v48 }
  0x9d   :  { %v811_v58 = vmul.f32 %v809_v54, %v377_v55  ;;  %v407_v2 = vpop.permute.xlu0 %406  ;;  %v394_v22 = vmul.f32 %v392_v20, %v377_v55 }
  0x9e   :  { %v820_v4 = vmul.f32 %v817_v57, %v407_v2  ;;  %v419_v34 = vmul.f32 %v416_v21, %v407_v2  ;;  %v620_v15 = vrot.slane %v1837_v19, %v619_v13 }
  0x9f   :  { %v1809_v1 = vadd.f32 %v819_v63, %v811_v58  ;;  %v422_v27 = vadd.f32 %v418_v23, %v394_v22 }
  0xa1   :  { %v399_v60 = vpop.permute.xlu1 %398  ;;  %v430_v36 = vadd.f32 %v428_v31, %v422_v27 }
  0xa2   :  { %v818_v62 = vmul.f32 %v817_v57, %v399_v60  ;;  %v417_v26 = vmul.f32 %v416_v21, %v399_v60 }
  0xa4   :  { %v1807_v0 = vadd.f32 %v818_v62, %v810_v59  ;;  %v421_v32 = vadd.f32 %v417_v26, %v393_v25  ;;  %v367_v25 = vld [vmem:[%s1975_s2 + $0x60] sm:$0xff] }
  0xa6   :  { %v382_v3 = vpop.permute.xlu1 %381  ;;  %v429_v39 = vadd.f32 %v428_v31, %v421_v32 }
  0xa7   :  { %v812_v5 = vmul.f32 %v809_v54, %v382_v3  ;;  %v395_v33 = vmul.f32 %v392_v20, %v382_v3  ;;  %v1849_v3 = vsel %vm348_vm15, 1.0, %v1667_v17 }
  0xa9   :  { %v1811_v6 = vadd.f32 %v820_v4, %v812_v5  ;;  %v363_v4 = vld [vmem:[%s1975_s2 + $0x40] sm:$0xff]  ;;  %v364_v5 = vld [vmem:[%s1975_s2 + $0x48] sm:$0xff] }
  0xaa   :  { %v387_v7 = vpop.permute.xlu1 %386 }
  0xab   :  { %v813_v8 = vmul.f32 %v809_v54, %v387_v7  ;;  %v396_v28 = vmul.f32 %v392_v20, %v387_v7  ;;  %v1589_v7 = vpack.c.bf16 %v364_v5, %v363_v4  ;;  %v802_v4 = vld [vmem:[%s1975_s2 + $0x98] sm:$0xff]  ;;  %v803_v5 = vld [vmem:[%s1975_s2 + $0xa0] sm:$0xff] }
  0xad   :  { %1590 = vmatprep.subr.bf16.mxu0 %v1589_v7 }
  0xae   :  { %1592 = vmatpush3.bf16.msra.mxu0 %v1589_v7  ;;  %v1001_v7 = vrot.slane %v1793_v51, %v619_v13 }
  0xaf   :  { %v411_v9 = vpop.permute.xlu1 %410 }
  0xb0   :  { %v821_v10 = vmul.f32 %v817_v57, %v411_v9  ;;  %v420_v29 = vmul.f32 %v416_v21, %v411_v9  ;;  %v366_v9 = vld [vmem:[%s1975_s2 + $0x58] sm:$0xff] }
  0xb2   :  { %v1813_v11 = vadd.f32 %v821_v10, %v813_v8  ;;  %v424_v35 = vadd.f32 %v420_v29, %v396_v28  ;;  %v365_v8 = vld [vmem:[%s1975_s2 + $0x50] sm:$0xff] }
  0xb3   :  { %v1593_v10 = vpack.c.bf16 %v366_v9, %v365_v8 }
  0xb4   :  { %v432_v46 = vadd.f32 %v428_v31, %v424_v35 }
 0x160   :  { %v1450_v37 = vpop.f32.mrb[0].mxu1 }
 0x161   :  { %v139_v38 = vpop.f32.mrb[1].mxu1 }
 0x163   :  { %v1464_v40 = vpop.f32.mrb[0].mxu0 }
 0x164   :  { %v1765_v41 = vadd.f32 %v1464_v40, %v1450_v37  ;;  %v305_v42 = vpop.f32.mrb[1].mxu0  ;;  %v423_v37 = vadd.f32 %v419_v34, %v395_v33  ;;  %v714_v34 = vsub.s32 4, %v1777_v48 }
 0x165   :  { %v1767_v44 = vadd.f32 %v305_v42, %v139_v38 }
 0x166   :  { %v431_v56 = vadd.f32 %v428_v31, %v423_v37  ;;  %v622_v16 = vmul.f32 %v1765_v41, %v620_v15  ;;  %v715_v35 = vrot.slane %v1837_v19, %v714_v34 }
 0x167   :  { %v1573_v45 = vpack.c.bf16 %v1765_v41, %v1767_v44  ;;  %v621_v20 = vmul.f32 %v1767_v44, %v620_v15  ;;  %v368_v41 = vld [vmem:[%s1975_s2 + $0x68] sm:$0xff]  ;;  %v627_v44 = vsub.s32 3, %v1777_v48 }
 0x168   :  { %v1597_v26 = vpack.c.bf16 %v368_v41, %v367_v25 }
 0x169   :  { %1574 = vmatprep.subr.bf16.mxu1 %v1573_v45  ;;  %v628_v27 = vrot.slane %v1837_v19, %v627_v44  ;;  %v799_v19 = vld [vmem:[%s1975_s2 + $0x80] sm:$0xff]  ;;  %v1009_v13 = vrot.slane %v1793_v51, %v627_v44  ;;  %v1096_v44 = vrot.slane %v1793_v51, %v714_v34 }
 0x16a   :  { %1576 = vmatpush3.bf16.msra.mxu1 %v1573_v45 }
 0x16d   :  { %1470 = vmatmul.mubr.msk.f32.vlgmr.msra.gmra.mrb[2].mxu1 %vm433_vm9, %v1774_v47 }
 0x16e   :  { %1472 = vmatprep.mubr.msk.f32.mxu1 %vm433_vm9, %v1780_v49 }
 0x171   :  { %1473 = vmatmul.mubr.msk.f32.gmra.mrb[4].mxu1 %vm433_vm9, %v1796_v52 }
 0x172   :  { %1483 = vmatprep.mubr.msk.f32.mxu1 %vm535_vm14, %v1824_v14 }
 0x240   :  { %v1471_v38 = vpop.f32.mrb[2].mxu1 }
 0x241   :  { %v518_v40 = vadd.f32 %v1471_v38, %v430_v36  ;;  %v512_v42 = vpop.f32.mrb[3].mxu1 }
 0x242   :  { %v513_v43 = vadd.f32 %v512_v42, %v429_v39 }
 0x243   :  { %v532_v45 = vmax.f32 %v518_v40, 0.0 }
 0x244   :  { %v531_v54 = vmax.f32 %v513_v43, 0.0  ;;  %v1474_v55 = vpop.f32.mrb[4].mxu1 }
 0x245   :  { %v528_v57 = vadd.f32 %v1474_v55, %v432_v46  ;;  %v522_v58 = vpop.f32.mrb[5].mxu1 }
 0x246   :  { %v1577_v59 = vpack.c.bf16 %v532_v45, %v531_v54  ;;  %v523_v60 = vadd.f32 %v522_v58, %v431_v56 }
 0x247   :  { %v534_v62 = vmax.f32 %v528_v57, 0.0 }
 0x248   :  { %v533_v63 = vmax.f32 %v523_v60, 0.0  ;;  %1578 = vmatprep.subr.bf16.mxu1 %v1577_v59 }
 0x249   :  { %1580 = vmatpush3.bf16.msra.mxu1 %v1577_v59 }
 0x24a   :  { %v1581_v2 = vpack.c.bf16 %v534_v62, %v533_v63 }
 0x24c   :  { %1582 = vmatprep.subr.bf16.mxu1 %v1581_v2 }
 0x24d   :  { %1584 = vmatpush3.bf16.msra.mxu1 %v1581_v2 }
 0x24e   :  { %1594 = vmatprep.subr.bf16.mxu1 %v1593_v10 }
 0x250   :  { %1484 = vmatmul.mubr.msk.f32.vlgmr.msra.gmra.mrb[6].mxu1 %vm535_vm14, %v1849_v3 }
 0x251   :  { %1596 = vmatpush3.bf16.msra.mxu1 %v1593_v10 }
 0x252   :  { %1598 = vmatprep.subr.bf16.mxu1 %v1597_v26 }
 0x255   :  { %1600 = vmatpush3.bf16.msra.mxu1 %v1597_v26 }
 0x323   :  { %v1485_v18 = vpop.f32.mrb[6].mxu1 }
 0x324   :  { %v624_v21 = vadd.f32 %v1485_v18, %v622_v16  ;;  %v608_v22 = vpop.f32.mrb[7].mxu1 }
 0x325   :  { %v623_v23 = vadd.f32 %v621_v20, %v608_v22  ;;  %v804_v20 = vld [vmem:[%s1975_s2 + $0xa8] sm:$0xff] }
 0x327   :  { %1494 = vmatprep.mubr.msk.f32.mxu0 %vm535_vm14, %v623_v23 }
 0x328   :  { %1495 = vmatmul.mubr.msk.f32.vlgmr.msra.gmra.mrb[2].mxu0 %vm535_vm14, %v624_v21  ;;  %v805_v21 = vld [vmem:[%s1975_s2 + $0xb0] sm:$0xff] }
 0x329   :  { %1512 = vmatprep.mubr.msk.f32.mxu0 %vm433_vm9, %v1759_v30  ;;  %v1625_v22 = vpack.c.bf16 %v805_v21, %v804_v20 }
 0x3fb   :  { %v1496_v28 = vpop.f32.mrb[2].mxu0 }
 0x3fc   :  { %v707_v29 = vadd.f32 %v1496_v28, %v628_v27  ;;  %v701_v30 = vpop.f32.mrb[3].mxu0 }
 0x3fd   :  { %v702_v31 = vadd.f32 %v701_v30, %v628_v27  ;;  %v356_v30 = vrot.slane %v1818_v12, %v1799_v53  ;;  %v1253_v53 = vld [vmem:[%s1977_s3 + $0x10] sm:$0xff] }
 0x3fe   :  { %v711_v33 = vmax.f32 %v707_v29, 0.0  ;;  %v1670_v29 = vmov 0.0|0.0  }
 0x3ff   :  { %v710_v32 = vmax.f32 %v702_v31, 0.0  ;;  %vm357_vm1 = vcmp.eq.s32.totalorder %v1777_v48, %v356_v30  ;;  %v1254_v48 = vld [vmem:[%s1977_s3 + $0x18] sm:$0xff] }
 0x400   :  { %v1636_v12 = vpack.c.bf16 %v1254_v48, %v1253_v53 }
 0x401   :  { %1505 = vmatprep.mubr.msk.f32.mxu1 %vm535_vm14, %v710_v32 }
 0x402   :  { %1506 = vmatmul.mubr.msk.f32.vlgmr.msra.gmra.mrb[8].mxu1 %vm535_vm14, %v711_v33 }
 0x403   :  { %1526 = vmatprep.mubr.msk.f32.mxu1 %vm535_vm14, %v1824_v14  ;;  %v798_v14 = vld [vmem:[%s1975_s2 + $0x78] sm:$0xff] }
 0x404   :  { %v1613_v42 = vpack.c.bf16 %v799_v19, %v798_v14  ;;  %v1255_v14 = vld [vmem:[%s1977_s3 + $0x20] sm:$0xff] }
 0x405   :  { %v1259_v19 = vrot.slane %v1255_v14, %v1788_v50 }
 0x4d5   :  { %v1507_v36 = vpop.f32.mrb[8].mxu1 }
 0x4d6   :  { %v794_v37 = vadd.f32 %v1507_v36, %v715_v35  ;;  %v788_v38 = vpop.f32.mrb[9].mxu1  ;;  %v1251_v36 = vld [vmem:[%s1977_s3] sm:$0xff] }
 0x4d7   :  { %v789_v39 = vadd.f32 %v788_v38, %v715_v35 }
 0x4d8   :  { %v1003_v8 = vmul.f32 %v1001_v7, %v794_v37 }
 0x4d9   :  { %v1601_v40 = vpack.c.bf16 %v794_v37, %v789_v39  ;;  %v1002_v10 = vmul.f32 %v1001_v7, %v789_v39  ;;  %v1252_v37 = vld [vmem:[%s1977_s3 + $0x8] sm:$0xff] }
 0x4da   :  { %v1633_v34 = vpack.c.bf16 %v1252_v37, %v1251_v36 }
 0x4db   :  { %1602 = vmatprep.subr.bf16.mxu0 %v1601_v40 }
 0x4dc   :  { %1604 = vmatpush3.bf16.msra.mxu0 %v1601_v40 }
 0x4dd   :  { %1614 = vmatprep.subr.bf16.mxu0 %v1613_v42 }
 0x4df   :  { %1513 = vmatmul.mubr.msk.f32.vlgmr.msra.gmra.mrb[4].mxu0 %vm433_vm9, %v1774_v47  ;;  %v829_v47 = vrot.slane %v1793_v51, %v427_v24  ;;  %v1356_v51 = vsel %vm357_vm1, 1.0, %v1667_v17 }
 0x4e0   :  { %1515 = vmatprep.mubr.msk.f32.mxu0 %vm433_vm9, %v1780_v49  ;;  %1616 = vmatpush3.bf16.msra.mxu0 %v1613_v42 }
 0x4e1   :  { %v831_v49 = vadd.f32 %v829_v47, %v1809_v1  ;;  %v833_v56 = vadd.f32 %v829_v47, %v1813_v11  ;;  %v832_v59 = vadd.f32 %v829_v47, %v1811_v6  ;;  %v801_v6 = vld [vmem:[%s1975_s2 + $0x90] sm:$0xff] }
 0x4e3   :  { %1516 = vmatmul.mubr.msk.f32.gmra.mrb[6].mxu0 %vm433_vm9, %v1796_v52  ;;  %v830_v52 = vadd.f32 %v829_v47, %v1807_v0  ;;  %v800_v0 = vld [vmem:[%s1975_s2 + $0x88] sm:$0xff] }
 0x4e4   :  { %v1617_v11 = vpack.c.bf16 %v801_v6, %v800_v0 }
 0x4e6   :  { %1618 = vmatprep.subr.bf16.mxu0 %v1617_v11 }
 0x4e7   :  { %1620 = vmatpush3.bf16.msra.mxu0 %v1617_v11 }
 0x4e8   :  { %1629 = vmatprep.subr.bf16.mxu0 %v1670_v29 }
 0x5b2   :  { %v1514_v43 = vpop.f32.mrb[4].mxu0 }
 0x5b3   :  { %v906_v45 = vadd.f32 %v1514_v43, %v831_v49  ;;  %v900_v46 = vpop.f32.mrb[5].mxu0 }
 0x5b4   :  { %v901_v54 = vadd.f32 %v900_v46, %v830_v52 }
 0x5b5   :  { %v920_v55 = vmax.f32 %v906_v45, 0.0 }
 0x5b6   :  { %v919_v57 = vmax.f32 %v901_v54, 0.0  ;;  %v1517_v58 = vpop.f32.mrb[6].mxu0 }
 0x5b7   :  { %v916_v60 = vadd.f32 %v1517_v58, %v833_v56  ;;  %v910_v61 = vpop.f32.mrb[7].mxu0 }
 0x5b8   :  { %v1605_v62 = vpack.c.bf16 %v920_v55, %v919_v57  ;;  %v911_v63 = vadd.f32 %v910_v61, %v832_v59 }
 0x5b9   :  { %v922_v24 = vmax.f32 %v916_v60, 0.0 }
 0x5ba   :  { %v921_v2 = vmax.f32 %v911_v63, 0.0  ;;  %1606 = vmatprep.subr.bf16.mxu1 %v1605_v62 }
 0x5bb   :  { %1608 = vmatpush3.bf16.msra.mxu1 %v1605_v62 }
 0x5bc   :  { %v1609_v1 = vpack.c.bf16 %v922_v24, %v921_v2 }
 0x5be   :  { %1610 = vmatprep.subr.bf16.mxu1 %v1609_v1 }
 0x5bf   :  { %1612 = vmatpush3.bf16.msra.mxu1 %v1609_v1 }
 0x5c2   :  { %1527 = vmatmul.mubr.msk.f32.vlgmr.msra.gmra.mrb[10].mxu1 %vm535_vm14, %v1849_v3  ;;  %v1621_v3 = vpack.c.bf16 %v803_v5, %v802_v4 }
 0x5c4   :  { %1622 = vmatprep.subr.bf16.mxu1 %v1621_v3 }
 0x5c5   :  { %1624 = vmatpush3.bf16.msra.mxu1 %v1621_v3 }
 0x5c6   :  { %1626 = vmatprep.subr.bf16.mxu1 %v1625_v22 }
 0x5c9   :  { %1628 = vmatpush3.bf16.msra.mxu1 %v1625_v22 }
 0x695   :  { %v1528_v9 = vpop.f32.mrb[10].mxu1 }
 0x696   :  { %v1005_v15 = vadd.f32 %v1528_v9, %v1003_v8  ;;  %v989_v16 = vpop.f32.mrb[11].mxu1 }
 0x697   :  { %v1004_v18 = vadd.f32 %v1002_v10, %v989_v16 }
 0x699   :  { %1537 = vmatprep.mubr.msk.f32.mxu0 %vm535_vm14, %v1004_v18 }
 0x69a   :  { %1538 = vmatmul.mubr.msk.f32.vlgmr.msra.gmra.mrb[8].mxu0 %vm535_vm14, %v1005_v15 }
 0x69b   :  { %1555 = vmatprep.mubr.msk.f32.mxu0 %vm1671_vm0, %v1667_v17 }
 0x76d   :  { %v1539_v23 = vpop.f32.mrb[8].mxu0 }
 0x76e   :  { %v1088_v25 = vadd.f32 %v1539_v23, %v1009_v13  ;;  %v1082_v41 = vpop.f32.mrb[9].mxu0 }
 0x76f   :  { %v1083_v26 = vadd.f32 %v1082_v41, %v1009_v13 }
 0x770   :  { %v1092_v28 = vmax.f32 %v1088_v25, 0.0 }
 0x771   :  { %v1091_v27 = vmax.f32 %v1083_v26, 0.0 }
 0x773   :  { %1548 = vmatprep.mubr.msk.f32.mxu1 %vm535_vm14, %v1091_v27 }
 0x774   :  { %1549 = vmatmul.mubr.msk.f32.vlgmr.msra.gmra.mrb[12].mxu1 %vm535_vm14, %v1092_v28 }
 0x847   :  { %v1550_v31 = vpop.f32.mrb[12].mxu1 }
 0x848   :  { %v1175_v32 = vadd.f32 %v1550_v31, %v1096_v44  ;;  %v1169_v33 = vpop.f32.mrb[13].mxu1 }
 0x849   :  { %v1170_v35 = vadd.f32 %v1169_v33, %v1096_v44 }
 0x84b   :  { %v1630_v38 = vpack.c.bf16 %v1175_v32, %v1170_v35 }
 0x84d   :  { %1631 = vmatpush3.bf16.msra.mxu0 %v1630_v38 }
 0x84e   :  { %1632 = vmatprep.subr.bf16.mxu0 %v1670_v29 }
 0x850   :  { %1556 = vmatmul.mubr.msk.f32.vlgmr.msra.gmra.mrb[10].mxu0 %vm433_vm9, %v1356_v51 }
 0x851   :  { %1634 = vmatpush3.bf16.msra.mxu0 %v1633_v34  ;;  %1566 = vmatprep.mubr.msk.f32.mxu0 %vm1671_vm0, %v1667_v17 }
 0x852   :  { %1635 = vmatprep.subr.bf16.mxu0 %v1670_v29 }
 0x855   :  { %1637 = vmatpush3.bf16.msra.mxu0 %v1636_v12 }
 0x923   :  { %v1247_v39 = vpop.f32.mrb[10].mxu0 }
 0x924   :  { %v1557_v40 = vpop.f32.mrb[11].mxu0  ;;  %1567 = vmatmul.mubr.msk.f32.vlgmr.msra.gmra.mrb[12].mxu0 %vm535_vm14, %v1247_v39 }
 0x9f7   :  { %v1329_v42 = vpop.f32.mrb[12].mxu0 }
 0x9f8   :  { %v1330_v47 = vadd.f32 %v1329_v42, %v1259_v19  ;;  %v1568_v49 = vpop.f32.mrb[13].mxu0 }
 0x9fa   :  { %1333 = vst [vmem:[%s1978_s4] sm:$0x3] %v1330_v47 }

</bundles_post_ra>
